<compile_context>
chip_gen: v6e
topology: v6e:2x2x1
jax: 0.10.0
libtpu: 0.0.40
codegen_flags: <defaults>
</compile_context>

<pallas_src>
import functools

import jax
import jax.numpy as jnp
from jax.experimental import pallas as pl
from jax.experimental.pallas import tpu as pltpu

INPUT_SIZE = 32
OUTPUT_SIZE = 8
HIDDEN_SIZES = (256, 256, 256, 256)
OUT_PAD = 128          # lane-dense output slab width (>= OUTPUT_SIZE)
MAX_BATCH_TILE = 256   # fills MXU M dim on v6e/v7x; multiple of 128 for v5e


def _round_up(x, m):
    return (x + m - 1) // m * m


def _choose_batch_tile(batch):
    """Pick (batch_tile, padded_batch). Prefers 256-row tiles; for medium
    batches splits into 2 tiles so v7x megacore has >1 grid step."""
    padded = _round_up(max(batch, 1), 8)
    if padded >= 2 * MAX_BATCH_TILE:
        tile = MAX_BATCH_TILE
    elif padded >= 16:
        tile = _round_up((padded + 1) // 2, 8)   # two tiles -> both TCs busy
    else:
        tile = padded                            # tiny batch: single tile
    return tile, _round_up(padded, tile)


def mlp_kernel(x_ref,
               w0_ref, b0_ref,
               w1_ref, b1_ref,
               w2_ref, b2_ref,
               w3_ref, b3_ref,
               wo_ref, bo_ref,
               o_ref):
    """Fused 5-layer MLP forward for one batch tile (all matmuls on the MXU).

    Matmul inputs are bf16 (native MXU throughput), accumulation is f32;
    bias add + ReLU stay in f32.
    """
    h = x_ref[...].astype(jnp.bfloat16)
    for w_ref, b_ref in ((w0_ref, b0_ref), (w1_ref, b1_ref),
                         (w2_ref, b2_ref), (w3_ref, b3_ref)):
        acc = jnp.dot(h, w_ref[...], preferred_element_type=jnp.float32)
        acc = acc + b_ref[...]                      # f32 bias add
        h = jnp.maximum(acc, 0.0).astype(jnp.bfloat16)   # F.relu
    out = jnp.dot(h, wo_ref[...], preferred_element_type=jnp.float32) + bo_ref[...]
    # output_activation = identity; use_actor=False -> no output_limit scaling
    o_ref[...] = out.astype(o_ref.dtype)


@functools.partial(jax.jit, static_argnames=("input_size", "output_size"))
def mlp_forward(x, params, *, input_size=INPUT_SIZE, output_size=OUTPUT_SIZE):
    # Glue: flatten to (-1, input_size) exactly like x.view(-1, input_size).
    x2d = x.reshape(-1, input_size).astype(jnp.float32)
    batch = x2d.shape[0]

    tile, padded_batch = _choose_batch_tile(batch)
    if padded_batch != batch:
        x2d = jnp.pad(x2d, ((0, padded_batch - batch), (0, 0)))
    n_tiles = padded_batch // tile

    (w0, b0), (w1, b1), (w2, b2), (w3, b3), (wo, bo) = params

    # bf16 matmul operands (f32 accumulation happens in-kernel).
    w0, w1, w2, w3 = (w.astype(jnp.bfloat16) for w in (w0, w1, w2, w3))
    # Pad the output projection to a lane-dense 128-wide slab (zeros beyond
    # output_size); the wrapper slices the real columns back out.
    wo = jnp.pad(wo.astype(jnp.bfloat16), ((0, 0), (0, OUT_PAD - output_size)))
    bo = jnp.pad(bo.astype(jnp.float32), ((0, 0), (0, OUT_PAD - output_size)))
    b0, b1, b2, b3 = (b.astype(jnp.float32) for b in (b0, b1, b2, b3))

    def const_spec(shape):
        # Whole-array block, same block every grid step -> DMAed once;
        # single-buffer it (no point double-buffering a constant block).
        return pl.BlockSpec(shape, lambda i: (0, 0),
                            pipeline_mode=pl.Buffered(1))

    out = pl.pallas_call(
        mlp_kernel,
        out_shape=jax.ShapeDtypeStruct((padded_batch, OUT_PAD), jnp.float32),
        grid_spec=pltpu.PrefetchScalarGridSpec(
            num_scalar_prefetch=0,
            grid=(n_tiles,),
            in_specs=[
                pl.BlockSpec((tile, input_size), lambda i: (i, 0)),
                const_spec(w0.shape), const_spec(b0.shape),
                const_spec(w1.shape), const_spec(b1.shape),
                const_spec(w2.shape), const_spec(b2.shape),
                const_spec(w3.shape), const_spec(b3.shape),
                const_spec(wo.shape), const_spec(bo.shape),
            ],
            out_specs=pl.BlockSpec((tile, OUT_PAD), lambda i: (i, 0)),
        ),
        compiler_params=pltpu.CompilerParams(
            dimension_semantics=("parallel",)),
    )(x2d, w0, b0, w1, b1, w2, b2, w3, b3, wo, bo)

    return out[:batch, :output_size]


def init_params(key, input_size=INPUT_SIZE, output_size=OUTPUT_SIZE,
                hidden_sizes=HIDDEN_SIZES):
    """Deterministic init mimicking torch.nn.Linear default (U(-1/sqrt(fan_in), +))."""
    params = []
    sizes = (input_size,) + tuple(hidden_sizes) + (output_size,)
    for fan_in, fan_out in zip(sizes[:-1], sizes[1:]):
        key, kw, kb = jax.random.split(key, 3)
        bound = 1.0 / jnp.sqrt(fan_in)
        w = jax.random.uniform(kw, (fan_in, fan_out), jnp.float32, -bound, bound)
        b = jax.random.uniform(kb, (1, fan_out), jnp.float32, -bound, bound)
        params.append((w, b))
    return params


def mlp_reference(x, params, input_size=INPUT_SIZE, emulate_bf16=False):
    """Pure-JAX reference of the PyTorch forward (optionally bf16 matmul inputs)."""
    h = x.reshape(-1, input_size).astype(jnp.float32)

    def mm(a, w):
        if emulate_bf16:
            a = a.astype(jnp.bfloat16).astype(jnp.float32)
            w = w.astype(jnp.bfloat16).astype(jnp.float32)
        return a @ w

    *hidden, (wo, bo) = params
    for w, b in hidden:
        h = jnp.maximum(mm(h, w) + b, 0.0)
    return mm(h, wo) + bo


if __name__ == "__main__":
    key = jax.random.PRNGKey(0)
    key, kx = jax.random.split(key)

    # Small example input: (2, 4, 8) -> view(-1, 32) gives (2, 32).
    x = jax.random.normal(kx, (2, 4, 8), jnp.float32)

    params = init_params(key)

    out = jax.block_until_ready(mlp_forward(x, params))
    assert out.shape == (2, OUTPUT_SIZE), out.shape

    # Tight check against a bf16-matmul-emulating reference (kernel semantics),
    # plus a loose check against the exact f32 PyTorch-equivalent forward.
    ref_bf16 = mlp_reference(x, params, emulate_bf16=True)
    ref_f32 = mlp_reference(x, params)
    assert jnp.allclose(out, ref_bf16, atol=2e-3, rtol=2e-3), float(
        jnp.max(jnp.abs(out - ref_bf16)))
    assert jnp.allclose(out, ref_f32, atol=5e-2, rtol=5e-2), float(
        jnp.max(jnp.abs(out - ref_f32)))

    print("KERNEL_OK")
</pallas_src>

<mosaic_0001>
module attributes {stable_mosaic.version = 11 : i64} {
  func.func @mlp_kernel(%arg0: i32, %arg1: memref<8x32xf32, #tpu.memory_space<vmem>>, %arg2: memref<32x256xbf16, #tpu.memory_space<vmem>>, %arg3: memref<1x256xf32, #tpu.memory_space<vmem>>, %arg4: memref<256x256xbf16, #tpu.memory_space<vmem>>, %arg5: memref<1x256xf32, #tpu.memory_space<vmem>>, %arg6: memref<256x256xbf16, #tpu.memory_space<vmem>>, %arg7: memref<1x256xf32, #tpu.memory_space<vmem>>, %arg8: memref<256x256xbf16, #tpu.memory_space<vmem>>, %arg9: memref<1x256xf32, #tpu.memory_space<vmem>>, %arg10: memref<256x128xbf16, #tpu.memory_space<vmem>>, %arg11: memref<1x128xf32, #tpu.memory_space<vmem>>, %arg12: memref<8x128xf32, #tpu.memory_space<vmem>>) attributes {dimension_semantics = [#tpu.dimension_semantics<parallel>], iteration_bounds = array<i64: 1>, scalar_prefetch = 0 : i64, scratch_operands = 0 : i64, tpu.core_type = #tpu.core_type<tc>, window_params = [{transform_indices = @transform_0, window_bounds = array<i64: 8, 32>}, {pipeline_mode = #tpu.pipeline_mode<synchronous>, transform_indices = @transform_1, window_bounds = array<i64: 32, 256>}, {pipeline_mode = #tpu.pipeline_mode<synchronous>, transform_indices = @transform_2, window_bounds = array<i64: 1, 256>}, {pipeline_mode = #tpu.pipeline_mode<synchronous>, transform_indices = @transform_3, window_bounds = array<i64: 256, 256>}, {pipeline_mode = #tpu.pipeline_mode<synchronous>, transform_indices = @transform_4, window_bounds = array<i64: 1, 256>}, {pipeline_mode = #tpu.pipeline_mode<synchronous>, transform_indices = @transform_5, window_bounds = array<i64: 256, 256>}, {pipeline_mode = #tpu.pipeline_mode<synchronous>, transform_indices = @transform_6, window_bounds = array<i64: 1, 256>}, {pipeline_mode = #tpu.pipeline_mode<synchronous>, transform_indices = @transform_7, window_bounds = array<i64: 256, 256>}, {pipeline_mode = #tpu.pipeline_mode<synchronous>, transform_indices = @transform_8, window_bounds = array<i64: 1, 256>}, {pipeline_mode = #tpu.pipeline_mode<synchronous>, transform_indices = @transform_9, window_bounds = array<i64: 256, 128>}, {pipeline_mode = #tpu.pipeline_mode<synchronous>, transform_indices = @transform_10, window_bounds = array<i64: 1, 128>}, {transform_indices = @transform_11, window_bounds = array<i64: 8, 128>}]} {
    %c0 = arith.constant 0 : index
    %c0_0 = arith.constant 0 : index
    %0 = vector.load %arg1[%c0, %c0_0] : memref<8x32xf32, #tpu.memory_space<vmem>>, vector<8x32xf32>
    %1 = arith.truncf %0 : vector<8x32xf32> to vector<8x32xbf16>
    %c0_1 = arith.constant 0 : index
    %c0_2 = arith.constant 0 : index
    %2 = vector.load %arg2[%c0_1, %c0_2] : memref<32x256xbf16, #tpu.memory_space<vmem>>, vector<32x256xbf16>
    %cst = arith.constant dense<0.000000e+00> : vector<8x256xf32>
    %3 = tpu.matmul %1, %2, %cst {dimension_numbers = #tpu.dot_dimension_numbers<[1], [0], [0], [1], [0, 0, 1, 1], [], []>} : vector<8x32xbf16>, vector<32x256xbf16>, vector<8x256xf32> -> vector<8x256xf32>
    %c0_3 = arith.constant 0 : index
    %c0_4 = arith.constant 0 : index
    %4 = vector.load %arg3[%c0_3, %c0_4] : memref<1x256xf32, #tpu.memory_space<vmem>>, vector<1x256xf32>
    %5 = vector.broadcast %4 : vector<1x256xf32> to vector<8x256xf32>
    %6 = arith.addf %3, %5 : vector<8x256xf32>
    %cst_5 = arith.constant 0.000000e+00 : f32
    %7 = vector.broadcast %cst_5 : f32 to vector<8x256xf32>
    %8 = arith.maximumf %6, %7 : vector<8x256xf32>
    %9 = arith.truncf %8 : vector<8x256xf32> to vector<8x256xbf16>
    %c0_6 = arith.constant 0 : index
    %c0_7 = arith.constant 0 : index
    %10 = vector.load %arg4[%c0_6, %c0_7] : memref<256x256xbf16, #tpu.memory_space<vmem>>, vector<256x256xbf16>
    %cst_8 = arith.constant dense<0.000000e+00> : vector<8x256xf32>
    %11 = tpu.matmul %9, %10, %cst_8 {dimension_numbers = #tpu.dot_dimension_numbers<[1], [0], [0], [1], [0, 0, 1, 1], [], []>} : vector<8x256xbf16>, vector<256x256xbf16>, vector<8x256xf32> -> vector<8x256xf32>
    %c0_9 = arith.constant 0 : index
    %c0_10 = arith.constant 0 : index
    %12 = vector.load %arg5[%c0_9, %c0_10] : memref<1x256xf32, #tpu.memory_space<vmem>>, vector<1x256xf32>
    %13 = vector.broadcast %12 : vector<1x256xf32> to vector<8x256xf32>
    %14 = arith.addf %11, %13 : vector<8x256xf32>
    %cst_11 = arith.constant 0.000000e+00 : f32
    %15 = vector.broadcast %cst_11 : f32 to vector<8x256xf32>
    %16 = arith.maximumf %14, %15 : vector<8x256xf32>
    %17 = arith.truncf %16 : vector<8x256xf32> to vector<8x256xbf16>
    %c0_12 = arith.constant 0 : index
    %c0_13 = arith.constant 0 : index
    %18 = vector.load %arg6[%c0_12, %c0_13] : memref<256x256xbf16, #tpu.memory_space<vmem>>, vector<256x256xbf16>
    %cst_14 = arith.constant dense<0.000000e+00> : vector<8x256xf32>
    %19 = tpu.matmul %17, %18, %cst_14 {dimension_numbers = #tpu.dot_dimension_numbers<[1], [0], [0], [1], [0, 0, 1, 1], [], []>} : vector<8x256xbf16>, vector<256x256xbf16>, vector<8x256xf32> -> vector<8x256xf32>
    %c0_15 = arith.constant 0 : index
    %c0_16 = arith.constant 0 : index
    %20 = vector.load %arg7[%c0_15, %c0_16] : memref<1x256xf32, #tpu.memory_space<vmem>>, vector<1x256xf32>
    %21 = vector.broadcast %20 : vector<1x256xf32> to vector<8x256xf32>
    %22 = arith.addf %19, %21 : vector<8x256xf32>
    %cst_17 = arith.constant 0.000000e+00 : f32
    %23 = vector.broadcast %cst_17 : f32 to vector<8x256xf32>
    %24 = arith.maximumf %22, %23 : vector<8x256xf32>
    %25 = arith.truncf %24 : vector<8x256xf32> to vector<8x256xbf16>
    %c0_18 = arith.constant 0 : index
    %c0_19 = arith.constant 0 : index
    %26 = vector.load %arg8[%c0_18, %c0_19] : memref<256x256xbf16, #tpu.memory_space<vmem>>, vector<256x256xbf16>
    %cst_20 = arith.constant dense<0.000000e+00> : vector<8x256xf32>
    %27 = tpu.matmul %25, %26, %cst_20 {dimension_numbers = #tpu.dot_dimension_numbers<[1], [0], [0], [1], [0, 0, 1, 1], [], []>} : vector<8x256xbf16>, vector<256x256xbf16>, vector<8x256xf32> -> vector<8x256xf32>
    %c0_21 = arith.constant 0 : index
    %c0_22 = arith.constant 0 : index
    %28 = vector.load %arg9[%c0_21, %c0_22] : memref<1x256xf32, #tpu.memory_space<vmem>>, vector<1x256xf32>
    %29 = vector.broadcast %28 : vector<1x256xf32> to vector<8x256xf32>
    %30 = arith.addf %27, %29 : vector<8x256xf32>
    %cst_23 = arith.constant 0.000000e+00 : f32
    %31 = vector.broadcast %cst_23 : f32 to vector<8x256xf32>
    %32 = arith.maximumf %30, %31 : vector<8x256xf32>
    %33 = arith.truncf %32 : vector<8x256xf32> to vector<8x256xbf16>
    %c0_24 = arith.constant 0 : index
    %c0_25 = arith.constant 0 : index
    %34 = vector.load %arg10[%c0_24, %c0_25] : memref<256x128xbf16, #tpu.memory_space<vmem>>, vector<256x128xbf16>
    %cst_26 = arith.constant dense<0.000000e+00> : vector<8x128xf32>
    %35 = tpu.matmul %33, %34, %cst_26 {dimension_numbers = #tpu.dot_dimension_numbers<[1], [0], [0], [1], [0, 0, 1, 1], [], []>} : vector<8x256xbf16>, vector<256x128xbf16>, vector<8x128xf32> -> vector<8x128xf32>
    %c0_27 = arith.constant 0 : index
    %c0_28 = arith.constant 0 : index
    %36 = vector.load %arg11[%c0_27, %c0_28] : memref<1x128xf32, #tpu.memory_space<vmem>>, vector<1x128xf32>
    %37 = vector.broadcast %36 : vector<1x128xf32> to vector<8x128xf32>
    %38 = arith.addf %35, %37 : vector<8x128xf32>
    %c0_29 = arith.constant 0 : index
    %c0_30 = arith.constant 0 : index
    %39 = vector.load %arg12[%c0_29, %c0_30] : memref<8x128xf32, #tpu.memory_space<vmem>>, vector<8x128xf32>
    tpu.vector_store %arg12[%c0_29, %c0_30], %38 {strides = array<i32>} : memref<8x128xf32, #tpu.memory_space<vmem>>, vector<8x128xf32>,
    return
  }
  func.func @transform_0(%arg0: i32) -> (i32, i32) {
    %c0_i32 = arith.constant 0 : i32
    %c0_i32_0 = arith.constant 0 : i32
    return %arg0, %c0_i32 : i32, i32
  }
  func.func @transform_1(%arg0: i32) -> (i32, i32) {
    %c0_i32 = arith.constant 0 : i32
    %c0_i32_0 = arith.constant 0 : i32
    %c0_i32_1 = arith.constant 0 : i32
    return %c0_i32, %c0_i32_0 : i32, i32
  }
  func.func @transform_2(%arg0: i32) -> (i32, i32) {
    %c0_i32 = arith.constant 0 : i32
    %c0_i32_0 = arith.constant 0 : i32
    %c0_i32_1 = arith.constant 0 : i32
    return %c0_i32, %c0_i32_0 : i32, i32
  }
  func.func @transform_3(%arg0: i32) -> (i32, i32) {
    %c0_i32 = arith.constant 0 : i32
    %c0_i32_0 = arith.constant 0 : i32
    %c0_i32_1 = arith.constant 0 : i32
    return %c0_i32, %c0_i32_0 : i32, i32
  }
  func.func @transform_4(%arg0: i32) -> (i32, i32) {
    %c0_i32 = arith.constant 0 : i32
    %c0_i32_0 = arith.constant 0 : i32
    %c0_i32_1 = arith.constant 0 : i32
    return %c0_i32, %c0_i32_0 : i32, i32
  }
  func.func @transform_5(%arg0: i32) -> (i32, i32) {
    %c0_i32 = arith.constant 0 : i32
    %c0_i32_0 = arith.constant 0 : i32
    %c0_i32_1 = arith.constant 0 : i32
    return %c0_i32, %c0_i32_0 : i32, i32
  }
  func.func @transform_6(%arg0: i32) -> (i32, i32) {
    %c0_i32 = arith.constant 0 : i32
    %c0_i32_0 = arith.constant 0 : i32
    %c0_i32_1 = arith.constant 0 : i32
    return %c0_i32, %c0_i32_0 : i32, i32
  }
  func.func @transform_7(%arg0: i32) -> (i32, i32) {
    %c0_i32 = arith.constant 0 : i32
    %c0_i32_0 = arith.constant 0 : i32
    %c0_i32_1 = arith.constant 0 : i32
    return %c0_i32, %c0_i32_0 : i32, i32
  }
  func.func @transform_8(%arg0: i32) -> (i32, i32) {
    %c0_i32 = arith.constant 0 : i32
    %c0_i32_0 = arith.constant 0 : i32
    %c0_i32_1 = arith.constant 0 : i32
    return %c0_i32, %c0_i32_0 : i32, i32
  }
  func.func @transform_9(%arg0: i32) -> (i32, i32) {
    %c0_i32 = arith.constant 0 : i32
    %c0_i32_0 = arith.constant 0 : i32
    %c0_i32_1 = arith.constant 0 : i32
    return %c0_i32, %c0_i32_0 : i32, i32
  }
  func.func @transform_10(%arg0: i32) -> (i32, i32) {
    %c0_i32 = arith.constant 0 : i32
    %c0_i32_0 = arith.constant 0 : i32
    %c0_i32_1 = arith.constant 0 : i32
    return %c0_i32, %c0_i32_0 : i32, i32
  }
  func.func @transform_11(%arg0: i32) -> (i32, i32) {
    %c0_i32 = arith.constant 0 : i32
    %c0_i32_0 = arith.constant 0 : i32
    return %arg0, %c0_i32 : i32, i32
  }
}

</mosaic_0001>

<bundles_post_ra>
// kernel: mlp_forward.1
= control target key start
LH: loop header
LB: loop body
LE: loop exit
PB: predicated region body
PF: predicated region fallthrough
CT: control target
= control target key end

     0   :  { %v1360_v1 = vmov 0   ;;  %vm77_vm0 = vcmask 261120   ;;  %s1802_s1 = inlined_call_operand.vmem [shape: bf16[32,256], index: 1, kind: input, shape index: {}]   ;;  %s1803_s0 = inlined_call_operand.vmem [shape: f32[8,32], index: 0, kind: input, shape index: {}]   ;;  %s1804_s3 = inlined_call_operand.vmem [shape: bf16[256,256], index: 3, kind: input, shape index: {}]   ;;  %s1805_s5 = inlined_call_operand.vmem [shape: bf16[256,256], index: 5, kind: input, shape index: {}]   ;;  %s1806_s2 = inlined_call_operand.vmem [shape: f32[1,256], index: 2, kind: input, shape index: {}]   ;;  %s1807_s7 = inlined_call_operand.vmem [shape: bf16[256,256], index: 7, kind: input, shape index: {}]   ;;  %s1808_s4 = inlined_call_operand.vmem [shape: f32[1,256], index: 4, kind: input, shape index: {}]   ;;  %s1809_s9 = inlined_call_operand.vmem [shape: bf16[256,128], index: 9, kind: input, shape index: {}]   ;;  %s1810_s6 = inlined_call_operand.vmem [shape: f32[1,256], index: 6, kind: input, shape index: {}]   ;;  %s1811_s8 = inlined_call_operand.vmem [shape: f32[1,256], index: 8, kind: input, shape index: {}]   ;;  %s1812_s10 = inlined_call_operand.vmem [shape: f32[1,128], index: 10, kind: input, shape index: {}]   ;;  %s1813_s11 = inlined_call_operand.vmem [shape: f32[8,128], index: 11, kind: output, shape index: {}]  }
   0x1   :  { %v1194_v0 = vld [vmem:[%s1802_s1 + $0x14] ss:$8 sps:$4 sm:$0xff]   ;;  %113 = vmatprep.mubr.bf16.mxu0 %v1360_v1  ;;  %v1196_v2 = vld [vmem:[%s1802_s1 + $0x10] ss:$8 sps:$4 sm:$0xff]   ;;  %v1197_v3 = vld [vmem:[%s1802_s1 + $0x4] ss:$8 sps:$4 sm:$0xff]  }
   0x2   :  { %93 = vmatprep.subr.bf16.mxu0 %v1194_v0  ;;  %v1199_v4 = vld [vmem:[%s1802_s1] ss:$8 sps:$4 sm:$0xff]   ;;  %v1200_v6 = vld [vmem:[%s1804_s3 + $0x74] ss:$8 sps:$4 sm:$0xff]   ;;  %v1202_v7 = vld [vmem:[%s1804_s3 + $0x70] ss:$8 sps:$4 sm:$0xff]  }
   0x3   :  { %v39_v5 = vld [vmem:[%s1803_s0] sm:$0xff]  ;;  %94 = vmatpush1.bf16.msra.mxu0 %v1196_v2  ;;  %330 = vmatprep.subr.bf16.mxu1 %v1200_v6  ;;  %v1206_v11 = vld [vmem:[%s1804_s3 + $0x54] ss:$8 sps:$4 sm:$0xff]   ;;  %v1208_v12 = vld [vmem:[%s1804_s3 + $0x50] ss:$8 sps:$4 sm:$0xff]  }
   0x4   :  { %95 = vmatprep.subr.bf16.mxu0 %v1197_v3  ;;  %v1203_v8 = vld [vmem:[%s1804_s3 + $0x64] ss:$8 sps:$4 sm:$0xff]   ;;  %v40_v9 = vpack.c.bf16 %v39_v5, %v39_v5  ;;  %331 = vmatpush1.bf16.msra.mxu1 %v1202_v7  ;;  %v1205_v10 = vld [vmem:[%s1804_s3 + $0x60] ss:$8 sps:$4 sm:$0xff]   ;;  %v1212_v15 = vld [vmem:[%s1804_s3 + $0x34] ss:$8 sps:$4 sm:$0xff]   ;;  %v47_v3 = vlaneseq }
   0x5   :  { %332 = vmatprep.subr.bf16.mxu1 %v1203_v8  ;;  %v1209_v13 = vld [vmem:[%s1804_s3 + $0x44] ss:$8 sps:$4 sm:$0xff]   ;;  %v1211_v14 = vld [vmem:[%s1804_s3 + $0x40] ss:$8 sps:$4 sm:$0xff]   ;;  %v1214_v16 = vld [vmem:[%s1804_s3 + $0x30] ss:$8 sps:$4 sm:$0xff]  }
   0x6   :  { %v1215_v17 = vld [vmem:[%s1804_s3 + $0x24] ss:$8 sps:$4 sm:$0xff]   ;;  %v1217_v18 = vld [vmem:[%s1804_s3 + $0x20] ss:$8 sps:$4 sm:$0xff]   ;;  %v1218_v19 = vld [vmem:[%s1804_s3 + $0x14] ss:$8 sps:$4 sm:$0xff]  }
   0x7   :  { %96 = vmatpush1.bf16.msra.mxu0 %v1199_v4  ;;  %v1220_v20 = vld [vmem:[%s1804_s3 + $0x10] ss:$8 sps:$4 sm:$0xff]   ;;  %v1221_v21 = vld [vmem:[%s1804_s3 + $0x4] ss:$8 sps:$4 sm:$0xff]   ;;  %v1223_v22 = vld [vmem:[%s1804_s3] ss:$8 sps:$4 sm:$0xff]  }
   0x8   :  { %333 = vmatpush1.bf16.msra.mxu1 %v1205_v10  ;;  %v1224_v23 = vld [vmem:[%s1804_s3 + $0xf4] ss:$8 sps:$4 sm:$0xff]   ;;  %v1226_v24 = vld [vmem:[%s1804_s3 + $0xf0] ss:$8 sps:$4 sm:$0xff]   ;;  %v1227_v25 = vld [vmem:[%s1804_s3 + $0xe4] ss:$8 sps:$4 sm:$0xff]  }
   0x9   :  { %334 = vmatprep.subr.bf16.mxu1 %v1206_v11  ;;  %v1229_v26 = vld [vmem:[%s1804_s3 + $0xe0] ss:$8 sps:$4 sm:$0xff]   ;;  %v1230_v27 = vld [vmem:[%s1804_s3 + $0xd4] ss:$8 sps:$4 sm:$0xff]   ;;  %v1232_v28 = vld [vmem:[%s1804_s3 + $0xd0] ss:$8 sps:$4 sm:$0xff]  }
   0xa   :  { %1057 = vmatmul.mubr.msk.bf16.vlgmr.msra.gmra.mxu0 %vm77_vm0, %v40_v9  ;;  %v1233_v29 = vld [vmem:[%s1804_s3 + $0xc4] ss:$8 sps:$4 sm:$0xff]   ;;  %v1235_v30 = vld [vmem:[%s1804_s3 + $0xc0] ss:$8 sps:$4 sm:$0xff]   ;;  %v1236_v31 = vld [vmem:[%s1804_s3 + $0xb4] ss:$8 sps:$4 sm:$0xff]  }
   0xb   :  { %v1238_v32 = vld [vmem:[%s1804_s3 + $0xb0] ss:$8 sps:$4 sm:$0xff]   ;;  %v1239_v33 = vld [vmem:[%s1804_s3 + $0xa4] ss:$8 sps:$4 sm:$0xff]   ;;  %v1241_v34 = vld [vmem:[%s1804_s3 + $0xa0] ss:$8 sps:$4 sm:$0xff]  }
   0xc   :  { %335 = vmatpush1.bf16.msra.mxu1 %v1208_v12  ;;  %v1242_v35 = vld [vmem:[%s1804_s3 + $0x94] ss:$8 sps:$4 sm:$0xff]   ;;  %v1244_v36 = vld [vmem:[%s1804_s3 + $0x90] ss:$8 sps:$4 sm:$0xff]   ;;  %v1245_v37 = vld [vmem:[%s1804_s3 + $0x84] ss:$8 sps:$4 sm:$0xff]  }
   0xd   :  { %336 = vmatprep.subr.bf16.mxu1 %v1209_v13  ;;  %v1247_v38 = vld [vmem:[%s1804_s3 + $0x80] ss:$8 sps:$4 sm:$0xff]   ;;  %v1248_v39 = vld [vmem:[%s1805_s5 + $0x70] ss:$8 sps:$4 sm:$0xff]   ;;  %v1250_v40 = vld [vmem:[%s1805_s5 + $0x74] ss:$8 sps:$4 sm:$0xff]  }
   0xe   :  { %v1253_v41 = vld [vmem:[%s1805_s5 + $0x64] ss:$8 sps:$4 sm:$0xff]   ;;  %579 = vmatprep.subr.bf16.mxu0 %v1250_v40  ;;  %v1251_v42 = vld [vmem:[%s1805_s5 + $0x60] ss:$8 sps:$4 sm:$0xff]   ;;  %v1256_v43 = vld [vmem:[%s1805_s5 + $0x54] ss:$8 sps:$4 sm:$0xff]  }
   0xf   :  { %580 = vmatpush1.bf16.msra.mxu0 %v1248_v39  ;;  %v1254_v44 = vld [vmem:[%s1805_s5 + $0x50] ss:$8 sps:$4 sm:$0xff]   ;;  %v1259_v45 = vld [vmem:[%s1805_s5 + $0x44] ss:$8 sps:$4 sm:$0xff]   ;;  %v1257_v46 = vld [vmem:[%s1805_s5 + $0x40] ss:$8 sps:$4 sm:$0xff]  }
  0x10   :  { %337 = vmatpush1.bf16.msra.mxu1 %v1211_v14  ;;  %581 = vmatprep.subr.bf16.mxu0 %v1253_v41  ;;  %v1262_v47 = vld [vmem:[%s1805_s5 + $0x34] ss:$8 sps:$4 sm:$0xff]   ;;  %v1260_v48 = vld [vmem:[%s1805_s5 + $0x30] ss:$8 sps:$4 sm:$0xff]   ;;  %v1265_v49 = vld [vmem:[%s1805_s5 + $0x24] ss:$8 sps:$4 sm:$0xff]  }
  0x11   :  { %338 = vmatprep.subr.bf16.mxu1 %v1212_v15  ;;  %v1263_v50 = vld [vmem:[%s1805_s5 + $0x20] ss:$8 sps:$4 sm:$0xff]   ;;  %v1268_v51 = vld [vmem:[%s1805_s5 + $0x14] ss:$8 sps:$4 sm:$0xff]   ;;  %v1266_v52 = vld [vmem:[%s1805_s5 + $0x10] ss:$8 sps:$4 sm:$0xff]  }
  0x12   :  { %v1271_v53 = vld [vmem:[%s1805_s5 + $0x4] ss:$8 sps:$4 sm:$0xff]   ;;  %v1269_v54 = vld [vmem:[%s1805_s5] ss:$8 sps:$4 sm:$0xff]   ;;  %v1274_v55 = vld [vmem:[%s1805_s5 + $0xf4] ss:$8 sps:$4 sm:$0xff]  }
  0x13   :  { %582 = vmatpush1.bf16.msra.mxu0 %v1251_v42  ;;  %v1272_v56 = vld [vmem:[%s1805_s5 + $0xf0] ss:$8 sps:$4 sm:$0xff]   ;;  %v1277_v57 = vld [vmem:[%s1805_s5 + $0xe4] ss:$8 sps:$4 sm:$0xff]   ;;  %v1275_v58 = vld [vmem:[%s1805_s5 + $0xe0] ss:$8 sps:$4 sm:$0xff]  }
  0x14   :  { %339 = vmatpush1.bf16.msra.mxu1 %v1214_v16  ;;  %583 = vmatprep.subr.bf16.mxu0 %v1256_v43  ;;  %v1280_v59 = vld [vmem:[%s1805_s5 + $0xd4] ss:$8 sps:$4 sm:$0xff]   ;;  %v1278_v60 = vld [vmem:[%s1805_s5 + $0xd0] ss:$8 sps:$4 sm:$0xff]   ;;  %v1283_v61 = vld [vmem:[%s1805_s5 + $0xc4] ss:$8 sps:$4 sm:$0xff]  }
  0x15   :  { %340 = vmatprep.subr.bf16.mxu1 %v1215_v17  ;;  %v1281_v62 = vld [vmem:[%s1805_s5 + $0xc0] ss:$8 sps:$4 sm:$0xff]   ;;  %v1286_v63 = vld [vmem:[%s1805_s5 + $0xb4] ss:$8 sps:$4 sm:$0xff]   ;;  %v1284_v0 = vld [vmem:[%s1805_s5 + $0xb0] ss:$8 sps:$4 sm:$0xff]  }
  0x16   :  { %v1289_v1 = vld [vmem:[%s1805_s5 + $0xa4] ss:$8 sps:$4 sm:$0xff]   ;;  %v1287_v2 = vld [vmem:[%s1805_s5 + $0xa0] ss:$8 sps:$4 sm:$0xff]   ;;  %v48_v4 = vshrl.u32 %v47_v3, 7 }
  0x17   :  { %584 = vmatpush1.bf16.msra.mxu0 %v1254_v44  ;;  %v45_v6 = vld [vmem:[%s1806_s2] sm:$0x3]  ;;  %v1322_v40 = vld [vmem:[%s1807_s7 + $0xf4] ss:$8 sps:$4 sm:$0xff]   ;;  %v1320_v41 = vld [vmem:[%s1807_s7 + $0xf0] ss:$8 sps:$4 sm:$0xff]  }
  0x18   :  { %341 = vmatpush1.bf16.msra.mxu1 %v1217_v18  ;;  %585 = vmatprep.subr.bf16.mxu0 %v1259_v45  ;;  %v1616_v5 = vsub.s32 0, %v48_v4  ;;  %v1621_v7 = vsub.s32 1, %v48_v4  ;;  %v1317_v39 = vld [vmem:[%s1807_s7] ss:$8 sps:$4 sm:$0xff]   ;;  %v1325_v42 = vld [vmem:[%s1807_s7 + $0xe4] ss:$8 sps:$4 sm:$0xff]  }
  0x19   :  { %342 = vmatprep.subr.bf16.mxu1 %v1218_v19  ;;  %v1323_v43 = vld [vmem:[%s1807_s7 + $0xe0] ss:$8 sps:$4 sm:$0xff]   ;;  %v1328_v44 = vld [vmem:[%s1807_s7 + $0xd4] ss:$8 sps:$4 sm:$0xff]   ;;  %v1326_v45 = vld [vmem:[%s1807_s7 + $0xd0] ss:$8 sps:$4 sm:$0xff]  }
  0x1a   :  { %v50_v8 = vrot.slane %v45_v6, %v1616_v5  ;;  %v54_v9 = vrot.slane %v45_v6, %v1621_v7  ;;  %v1343_v3 = vld [vmem:[%s1807_s7 + $0x84] ss:$8 sps:$4 sm:$0xff]   ;;  %v1341_v4 = vld [vmem:[%s1807_s7 + $0x80] ss:$8 sps:$4 sm:$0xff]   ;;  %v1344_v6 = vld [vmem:[%s1809_s9 + $0x78] sm:$0xff]  }
  0x1b   :  { %586 = vmatpush1.bf16.msra.mxu0 %v1257_v46  ;;  %v1331_v46 = vld [vmem:[%s1807_s7 + $0xc4] ss:$8 sps:$4 sm:$0xff]  }
  0x1c   :  { %343 = vmatpush1.bf16.msra.mxu1 %v1220_v20  ;;  %587 = vmatprep.subr.bf16.mxu0 %v1262_v47  ;;  %v1292_v20 = vld [vmem:[%s1805_s5 + $0x94] ss:$8 sps:$4 sm:$0xff]   ;;  %v1329_v47 = vld [vmem:[%s1807_s7 + $0xc0] ss:$8 sps:$4 sm:$0xff]  }
  0x1d   :  { %344 = vmatprep.subr.bf16.mxu1 %v1221_v21  ;;  %v1290_v21 = vld [vmem:[%s1805_s5 + $0x90] ss:$8 sps:$4 sm:$0xff]  }
  0x1f   :  { %588 = vmatpush1.bf16.msra.mxu0 %v1260_v48  ;;  %v1334_v48 = vld [vmem:[%s1807_s7 + $0xb4] ss:$8 sps:$4 sm:$0xff]  }
  0x20   :  { %345 = vmatpush1.bf16.msra.mxu1 %v1223_v22  ;;  %589 = vmatprep.subr.bf16.mxu0 %v1265_v49  ;;  %v1295_v22 = vld [vmem:[%s1805_s5 + $0x84] ss:$8 sps:$4 sm:$0xff]   ;;  %v1332_v49 = vld [vmem:[%s1807_s7 + $0xb0] ss:$8 sps:$4 sm:$0xff]  }
  0x21   :  { %346 = vmatprep.subr.bf16.mxu1 %v1224_v23  ;;  %v1293_v23 = vld [vmem:[%s1805_s5 + $0x80] ss:$8 sps:$4 sm:$0xff]  }
  0x23   :  { %590 = vmatpush1.bf16.msra.mxu0 %v1263_v50  ;;  %v1337_v50 = vld [vmem:[%s1807_s7 + $0xa4] ss:$8 sps:$4 sm:$0xff]  }
  0x24   :  { %347 = vmatpush2.bf16.msra.mxu1 %v1226_v24  ;;  %591 = vmatprep.subr.bf16.mxu0 %v1268_v51  ;;  %v1296_v24 = vld [vmem:[%s1807_s7 + $0x70] ss:$8 sps:$4 sm:$0xff]   ;;  %v1335_v51 = vld [vmem:[%s1807_s7 + $0xa0] ss:$8 sps:$4 sm:$0xff]  }
  0x25   :  { %348 = vmatprep.subr.bf16.mxu1 %v1227_v25  ;;  %v1298_v25 = vld [vmem:[%s1807_s7 + $0x74] ss:$8 sps:$4 sm:$0xff]  }
  0x27   :  { %592 = vmatpush1.bf16.msra.mxu0 %v1266_v52  ;;  %v158_v52 = vld [vmem:[%s1808_s4] sm:$0x3] }
  0x28   :  { %349 = vmatpush2.bf16.msra.mxu1 %v1229_v26  ;;  %593 = vmatprep.subr.bf16.mxu0 %v1271_v53  ;;  %v1301_v26 = vld [vmem:[%s1807_s7 + $0x64] ss:$8 sps:$4 sm:$0xff]   ;;  %v163_v53 = vrot.slane %v158_v52, %v1616_v5 }
  0x29   :  { %350 = vmatprep.subr.bf16.mxu1 %v1230_v27  ;;  %v1299_v27 = vld [vmem:[%s1807_s7 + $0x60] ss:$8 sps:$4 sm:$0xff]  }
  0x2b   :  { %594 = vmatpush1.bf16.msra.mxu0 %v1269_v54  ;;  %v167_v54 = vrot.slane %v158_v52, %v1621_v7 }
  0x2c   :  { %351 = vmatpush2.bf16.msra.mxu1 %v1232_v28  ;;  %595 = vmatprep.subr.bf16.mxu0 %v1274_v55  ;;  %v1304_v28 = vld [vmem:[%s1807_s7 + $0x54] ss:$8 sps:$4 sm:$0xff]  }
  0x2d   :  { %352 = vmatprep.subr.bf16.mxu1 %v1233_v29  ;;  %v1302_v29 = vld [vmem:[%s1807_s7 + $0x50] ss:$8 sps:$4 sm:$0xff]  }
  0x2f   :  { %596 = vmatpush2.bf16.msra.mxu0 %v1272_v56 }
  0x30   :  { %353 = vmatpush2.bf16.msra.mxu1 %v1235_v30  ;;  %597 = vmatprep.subr.bf16.mxu0 %v1277_v57  ;;  %v1307_v30 = vld [vmem:[%s1807_s7 + $0x44] ss:$8 sps:$4 sm:$0xff]  }
  0x31   :  { %354 = vmatprep.subr.bf16.mxu1 %v1236_v31  ;;  %v1305_v31 = vld [vmem:[%s1807_s7 + $0x40] ss:$8 sps:$4 sm:$0xff]  }
  0x33   :  { %598 = vmatpush2.bf16.msra.mxu0 %v1275_v58 }
  0x34   :  { %355 = vmatpush2.bf16.msra.mxu1 %v1238_v32  ;;  %599 = vmatprep.subr.bf16.mxu0 %v1280_v59  ;;  %v1310_v32 = vld [vmem:[%s1807_s7 + $0x34] ss:$8 sps:$4 sm:$0xff]  }
  0x35   :  { %356 = vmatprep.subr.bf16.mxu1 %v1239_v33  ;;  %v1308_v33 = vld [vmem:[%s1807_s7 + $0x30] ss:$8 sps:$4 sm:$0xff]  }
  0x37   :  { %600 = vmatpush2.bf16.msra.mxu0 %v1278_v60 }
  0x38   :  { %357 = vmatpush2.bf16.msra.mxu1 %v1241_v34  ;;  %601 = vmatprep.subr.bf16.mxu0 %v1283_v61  ;;  %v1313_v34 = vld [vmem:[%s1807_s7 + $0x24] ss:$8 sps:$4 sm:$0xff]  }
  0x39   :  { %358 = vmatprep.subr.bf16.mxu1 %v1242_v35  ;;  %v1311_v35 = vld [vmem:[%s1807_s7 + $0x20] ss:$8 sps:$4 sm:$0xff]  }
  0x3b   :  { %602 = vmatpush2.bf16.msra.mxu0 %v1281_v62 }
  0x3c   :  { %359 = vmatpush2.bf16.msra.mxu1 %v1244_v36  ;;  %603 = vmatprep.subr.bf16.mxu0 %v1286_v63  ;;  %v1316_v36 = vld [vmem:[%s1807_s7 + $0x14] ss:$8 sps:$4 sm:$0xff]  }
  0x3d   :  { %360 = vmatprep.subr.bf16.mxu1 %v1245_v37  ;;  %v1314_v37 = vld [vmem:[%s1807_s7 + $0x10] ss:$8 sps:$4 sm:$0xff]  }
  0x3f   :  { %604 = vmatpush2.bf16.msra.mxu0 %v1284_v0 }
  0x40   :  { %361 = vmatpush2.bf16.msra.mxu1 %v1247_v38  ;;  %605 = vmatprep.subr.bf16.mxu0 %v1289_v1  ;;  %v1319_v38 = vld [vmem:[%s1807_s7 + $0x4] ss:$8 sps:$4 sm:$0xff]   ;;  %v1340_v1 = vld [vmem:[%s1807_s7 + $0x94] ss:$8 sps:$4 sm:$0xff]  }
  0x41   :  { %828 = vmatprep.subr.bf16.mxu1 %v1298_v25 }
  0x43   :  { %606 = vmatpush2.bf16.msra.mxu0 %v1287_v2  ;;  %v1338_v2 = vld [vmem:[%s1807_s7 + $0x90] ss:$8 sps:$4 sm:$0xff]  }
  0x44   :  { %607 = vmatprep.subr.bf16.mxu0 %v1292_v20 }
  0x47   :  { %608 = vmatpush2.bf16.msra.mxu0 %v1290_v21 }
  0x48   :  { %609 = vmatprep.subr.bf16.mxu0 %v1295_v22 }
  0x4b   :  { %610 = vmatpush2.bf16.msra.mxu0 %v1293_v23 }
  0x4c   :  { %1171 = vmatprep.subr.bf16.mxu0 %v1344_v6 }
  0xca   :  { %v115_v10 = vpop.f32.mrf.mxu0 }
  0xcb   :  { %v116_v11 = vadd.f32 %v115_v10, %v50_v8  ;;  %v1345_v8 = vld [vmem:[%s1809_s9 + $0x38] sm:$0xff]   ;;  %v1347_v10 = vld [vmem:[%s1809_s9 + $0x30] sm:$0xff]  }
  0xcc   :  { %v117_v12 = vpop.f32.mrf.mxu0 }
  0xcd   :  { %v118_v13 = vadd.f32 %v117_v12, %v54_v9  ;;  %v122_v14 = vmax.f32 %v116_v11, 0.0  ;;  %v1346_v9 = vld [vmem:[%s1809_s9 + $0x70] sm:$0xff]   ;;  %v1348_v11 = vld [vmem:[%s1809_s9 + $0x68] sm:$0xff]  }
  0xce   :  { %v119_v15 = vpop.f32.mrf.mxu0  ;;  %v1349_v12 = vld [vmem:[%s1809_s9 + $0x28] sm:$0xff]  }
  0xcf   :  { %v123_v16 = vmax.f32 %v118_v13, 0.0  ;;  %v124_v19 = vpack.c.bf16 %v122_v14, %v122_v14  ;;  %v1350_v13 = vld [vmem:[%s1809_s9 + $0x60] sm:$0xff]   ;;  %v1352_v15 = vld [vmem:[%s1809_s9 + $0x58] sm:$0xff]  }
  0xd0   :  { %v120_v17 = vpop.f32.mrf.mxu0  ;;  %v1351_v14 = vld [vmem:[%s1809_s9 + $0x20] sm:$0xff]  }
  0xd1   :  { %v125_v18 = vpack.c.bf16 %v123_v16, %v123_v16  ;;  %v1353_v16 = vld [vmem:[%s1809_s9 + $0x18] sm:$0xff]   ;;  %v1354_v17 = vld [vmem:[%s1809_s9 + $0x50] sm:$0xff]  }
  0xd3   :  { %362 = vmatprep.mubr.bf16.mxu1 %v125_v18  ;;  %v1355_v18 = vld [vmem:[%s1809_s9 + $0x10] sm:$0xff]  }
  0xd4   :  { %363 = vmatmul.mubr.bf16.vlgmr.msra.gmra.mxu1 %v124_v19  ;;  %v407_v19 = vld [vmem:[%s1810_s6] sm:$0x3] }
  0xd5   :  { %829 = vmatpush1.bf16.msra.mxu1 %v1296_v24  ;;  %v412_v20 = vrot.slane %v407_v19, %v1616_v5  ;;  %v416_v21 = vrot.slane %v407_v19, %v1621_v7 }
  0xd6   :  { %830 = vmatprep.subr.bf16.mxu1 %v1301_v26 }
  0xd9   :  { %831 = vmatpush1.bf16.msra.mxu1 %v1299_v27 }
  0xda   :  { %832 = vmatprep.subr.bf16.mxu1 %v1304_v28 }
  0xdd   :  { %833 = vmatpush1.bf16.msra.mxu1 %v1302_v29 }
  0xde   :  { %834 = vmatprep.subr.bf16.mxu1 %v1307_v30 }
  0xe1   :  { %835 = vmatpush1.bf16.msra.mxu1 %v1305_v31 }
  0xe2   :  { %836 = vmatprep.subr.bf16.mxu1 %v1310_v32  ;;  %v1356_v32 = vld [vmem:[%s1809_s9 + $0x48] sm:$0xff]  }
  0xe5   :  { %837 = vmatpush1.bf16.msra.mxu1 %v1308_v33  ;;  %v1357_v33 = vld [vmem:[%s1809_s9 + $0x8] sm:$0xff]  }
  0xe6   :  { %838 = vmatprep.subr.bf16.mxu1 %v1313_v34  ;;  %v1358_v34 = vld [vmem:[%s1809_s9 + $0x40] sm:$0xff]  }
  0xe9   :  { %839 = vmatpush1.bf16.msra.mxu1 %v1311_v35  ;;  %v1359_v35 = vld [vmem:[%s1809_s9] sm:$0xff]  }
  0xea   :  { %840 = vmatprep.subr.bf16.mxu1 %v1316_v36  ;;  %v656_v36 = vld [vmem:[%s1811_s8] sm:$0x3] }
  0xed   :  { %841 = vmatpush1.bf16.msra.mxu1 %v1314_v37  ;;  %v661_v37 = vrot.slane %v656_v36, %v1616_v5 }
  0xee   :  { %842 = vmatprep.subr.bf16.mxu1 %v1319_v38  ;;  %v665_v38 = vrot.slane %v656_v36, %v1621_v7 }
  0xf1   :  { %843 = vmatpush1.bf16.msra.mxu1 %v1317_v39 }
  0xf2   :  { %844 = vmatprep.subr.bf16.mxu1 %v1322_v40 }
  0xf5   :  { %845 = vmatpush2.bf16.msra.mxu1 %v1320_v41 }
  0xf6   :  { %846 = vmatprep.subr.bf16.mxu1 %v1325_v42 }
  0xf9   :  { %847 = vmatpush2.bf16.msra.mxu1 %v1323_v43 }
  0xfa   :  { %848 = vmatprep.subr.bf16.mxu1 %v1328_v44 }
  0xfd   :  { %849 = vmatpush2.bf16.msra.mxu1 %v1326_v45 }
  0xfe   :  { %850 = vmatprep.subr.bf16.mxu1 %v1331_v46 }
 0x101   :  { %851 = vmatpush2.bf16.msra.mxu1 %v1329_v47 }
 0x102   :  { %852 = vmatprep.subr.bf16.mxu1 %v1334_v48 }
 0x105   :  { %853 = vmatpush2.bf16.msra.mxu1 %v1332_v49 }
 0x106   :  { %854 = vmatprep.subr.bf16.mxu1 %v1337_v50  ;;  %v1154_v50 = vld [vmem:[%s1812_s10] ss:$0 sm:$0xff] }
 0x109   :  { %855 = vmatpush2.bf16.msra.mxu1 %v1335_v51 }
 0x10a   :  { %856 = vmatprep.subr.bf16.mxu1 %v1340_v1 }
 0x10d   :  { %857 = vmatpush2.bf16.msra.mxu1 %v1338_v2 }
 0x10e   :  { %858 = vmatprep.subr.bf16.mxu1 %v1343_v3 }
 0x111   :  { %859 = vmatpush2.bf16.msra.mxu1 %v1341_v4 }
 0x194   :  { %v364_v55 = vpop.f32.mrf.mxu1 }
 0x195   :  { %v365_v56 = vadd.f32 %v364_v55, %v163_v53 }
 0x196   :  { %v366_v57 = vpop.f32.mrf.mxu1 }
 0x197   :  { %v367_v58 = vadd.f32 %v366_v57, %v167_v54  ;;  %v371_v59 = vmax.f32 %v365_v56, 0.0 }
 0x198   :  { %v368_v60 = vpop.f32.mrf.mxu1 }
 0x199   :  { %v372_v61 = vmax.f32 %v367_v58, 0.0  ;;  %v373_v0 = vpack.c.bf16 %v371_v59, %v371_v59 }
 0x19a   :  { %v369_v62 = vpop.f32.mrf.mxu1 }
 0x19b   :  { %v374_v63 = vpack.c.bf16 %v372_v61, %v372_v61 }
 0x19d   :  { %611 = vmatprep.mubr.bf16.mxu0 %v374_v63 }
 0x19e   :  { %612 = vmatmul.mubr.bf16.vlgmr.msra.gmra.mxu0 %v373_v0 }
 0x19f   :  { %1172 = vmatpush3.bf16.msra.mxu0 %v1345_v8 }
 0x1a0   :  { %1173 = vmatprep.subr.bf16.mxu0 %v1346_v9 }
 0x1a3   :  { %1174 = vmatpush3.bf16.msra.mxu0 %v1347_v10 }
 0x1a4   :  { %1175 = vmatprep.subr.bf16.mxu0 %v1348_v11 }
 0x1a7   :  { %1176 = vmatpush3.bf16.msra.mxu0 %v1349_v12 }
 0x1a8   :  { %1177 = vmatprep.subr.bf16.mxu0 %v1350_v13 }
 0x1ab   :  { %1178 = vmatpush3.bf16.msra.mxu0 %v1351_v14 }
 0x1ac   :  { %1179 = vmatprep.subr.bf16.mxu0 %v1352_v15 }
 0x1af   :  { %1180 = vmatpush3.bf16.msra.mxu0 %v1353_v16 }
 0x1b0   :  { %1181 = vmatprep.subr.bf16.mxu0 %v1354_v17 }
 0x1b3   :  { %1182 = vmatpush3.bf16.msra.mxu0 %v1355_v18 }
 0x1b4   :  { %1183 = vmatprep.subr.bf16.mxu0 %v1356_v32 }
 0x1b7   :  { %1184 = vmatpush3.bf16.msra.mxu0 %v1357_v33 }
 0x1b8   :  { %1185 = vmatprep.subr.bf16.mxu0 %v1358_v34 }
 0x1bb   :  { %1186 = vmatpush3.bf16.msra.mxu0 %v1359_v35 }
 0x25e   :  { %v613_v22 = vpop.f32.mrf.mxu0 }
 0x25f   :  { %v614_v23 = vadd.f32 %v613_v22, %v412_v20 }
 0x260   :  { %v615_v24 = vpop.f32.mrf.mxu0 }
 0x261   :  { %v616_v25 = vadd.f32 %v615_v24, %v416_v21  ;;  %v620_v26 = vmax.f32 %v614_v23, 0.0 }
 0x262   :  { %v617_v27 = vpop.f32.mrf.mxu0 }
 0x263   :  { %v621_v28 = vmax.f32 %v616_v25, 0.0  ;;  %v622_v31 = vpack.c.bf16 %v620_v26, %v620_v26 }
 0x264   :  { %v618_v29 = vpop.f32.mrf.mxu0 }
 0x265   :  { %v623_v30 = vpack.c.bf16 %v621_v28, %v621_v28 }
 0x267   :  { %860 = vmatprep.mubr.bf16.mxu1 %v623_v30 }
 0x268   :  { %861 = vmatmul.mubr.bf16.vlgmr.msra.gmra.mxu1 %v622_v31 }
 0x328   :  { %v862_v39 = vpop.f32.mrf.mxu1 }
 0x329   :  { %v863_v40 = vadd.f32 %v862_v39, %v661_v37 }
 0x32a   :  { %v864_v41 = vpop.f32.mrf.mxu1 }
 0x32b   :  { %v865_v42 = vadd.f32 %v864_v41, %v665_v38  ;;  %v869_v43 = vmax.f32 %v863_v40, 0.0 }
 0x32c   :  { %v866_v44 = vpop.f32.mrf.mxu1 }
 0x32d   :  { %v870_v45 = vmax.f32 %v865_v42, 0.0  ;;  %v871_v48 = vpack.c.bf16 %v869_v43, %v869_v43 }
 0x32e   :  { %v867_v46 = vpop.f32.mrf.mxu1 }
 0x32f   :  { %v872_v47 = vpack.c.bf16 %v870_v45, %v870_v45 }
 0x331   :  { %1040 = vmatprep.mubr.bf16.mxu0 %v872_v47 }
 0x332   :  { %1041 = vmatmul.mubr.bf16.vlgmr.msra.gmra.mxu0 %v871_v48 }
 0x3f2   :  { %v1187_v49 = vpop.f32.mrf.mxu0 }
 0x3f4   :  { %v1188_v5 = vpop.f32.mrf.mxu0 }
 0x3f5   :  { %v1189_v51 = vadd.f32 %v1188_v5, %v1187_v49 }
 0x3f6   :  { %v1190_v7 = vpop.f32.mrf.mxu0 }
 0x3f7   :  { %v1043_v52 = vadd.f32 %v1189_v51, %v1154_v50 }
 0x3f8   :  { %v1191_v53 = vpop.f32.mrf.mxu0 }
 0x3f9   :  { %1048 = vst [vmem:[%s1813_s11] sm:$0xff] %v1043_v52 }

</bundles_post_ra>
